<compile_context>
chip_gen: v5e
topology: v5e:2x2
jax: 0.10.0
libtpu: 0.0.40
codegen_flags: <defaults>
</compile_context>

<pallas_src>
import jax
import jax.numpy as jnp
from jax.experimental import pallas as pl
from jax.experimental.pallas import tpu as pltpu


# ~32 MiB of double-buffered VMEM (x + out, 8-sublane padded, f32) at F=2;
# keeps the same code safe on v5e/v6e (128 MiB) and v7x (64 MiB).
_MAX_TILE_B = 262144
_DEFAULT_TILE_B = 131072  # ~1 MiB of x streamed per grid step at F=2 f32


def _logreg_kernel(xt_ref, w_ref, b_ref, o_ref):
    # xt_ref: (F, TB) VMEM block — batch on the 128-lane axis (lane-dense)
    # w_ref : (F,)    f32 weights in SMEM (scalar reads, VPU splat)
    # b_ref : (1,)    f32 bias in SMEM
    # o_ref : (1, TB) lane-dense output block
    num_features = xt_ref.shape[0]
    # Upcast after load (bf16 callers stream bf16 over HBM, compute in f32 —
    # required on v5e, correct everywhere).
    z = w_ref[0] * xt_ref[0:1, :].astype(jnp.float32)
    for f in range(1, num_features):            # static unroll, F is tiny
        z = z + w_ref[f] * xt_ref[f:f + 1, :].astype(jnp.float32)
    z = z + b_ref[0]
    # Exact f32 sigmoid (overflow -> inf -> 0); kernel is HBM-bound, so the
    # exact divide is free — no approx reciprocal needed.
    o_ref[...] = (1.0 / (1.0 + jnp.exp(-z))).astype(o_ref.dtype)


def _pick_tile_b(batch, tile_b):
    """Lane-dense batch tile: multiple of 128 (or == batch for one block)."""
    if batch <= 256:
        return batch                      # single full block (always legal)
    tb = max(128, min(int(tile_b), _MAX_TILE_B))
    tb = (tb // 128) * 128                # lane multiple
    # Keep >= 2 grid steps so dimension_semantics=("parallel",) can shard the
    # batch axis across v7x's two TensorCores (harmless on v5e/v6e).
    half = -(-batch // 2)
    half = -(-half // 128) * 128
    return min(tb, half)


def logreg_forward_feature_major(xt, weight, bias, *, tile_b=_DEFAULT_TILE_B):
    """Fast path: feature-major activations, no wrapper transpose / pad.

    xt:     (F, B)  float32 or bfloat16 — batch on the minor (lane) axis
    weight: (1, F)  nn.Linear weight layout
    bias:   (1,)
    returns (B, 1) in xt.dtype
    """
    num_features, batch = xt.shape
    dtype = xt.dtype

    w_1d = weight.reshape(num_features).astype(jnp.float32)
    b_1d = bias.reshape(1).astype(jnp.float32)

    tb = _pick_tile_b(batch, tile_b)
    grid = (pl.cdiv(batch, tb),)          # partial last block handled by Pallas

    out = pl.pallas_call(
        _logreg_kernel,
        out_shape=jax.ShapeDtypeStruct((1, batch), dtype),
        grid_spec=pltpu.PrefetchScalarGridSpec(
            num_scalar_prefetch=0,
            grid=grid,
            in_specs=[
                # Streamed, double-buffered lane-dense batch tiles of x.
                pl.BlockSpec((num_features, tb), lambda i: (0, i)),
                # Weights + bias as SMEM scalars (no padded VMEM tile / DMA).
                pl.BlockSpec(memory_space=pltpu.MemorySpace.SMEM),
                pl.BlockSpec(memory_space=pltpu.MemorySpace.SMEM),
            ],
            out_specs=pl.BlockSpec((1, tb), lambda i: (0, i)),
        ),
        compiler_params=pltpu.CompilerParams(
            dimension_semantics=("parallel",),   # megacore sharding on v7x
            vmem_limit_bytes=48 * 1024 * 1024,   # covers tb up to 262144; v7x-safe
        ),
    )(xt, w_1d, b_1d)

    return out.reshape(batch, 1)


def logreg_forward(x, weight, bias, *, tile_b=_DEFAULT_TILE_B):
    """PyTorch-layout wrapper: x is (B, F) as in nn.Linear.

    NOTE: the transpose below is one extra HBM read+write of x. For the
    bandwidth-bound regime, keep activations feature-major upstream and call
    logreg_forward_feature_major directly.
    """
    return logreg_forward_feature_major(x.T, weight, bias, tile_b=tile_b)


def logreg_accuracy(pred, y):
    """JAX equivalent of LogReg.accuracy (tiny reduction — plain JAX glue)."""
    predictions = jnp.where(pred > 0.5, 1, 0).squeeze(-1)
    acc = jnp.sum(predictions == jnp.squeeze(y, -1)).astype(jnp.float32) / y.shape[0]
    return acc


if __name__ == "__main__":
    key = jax.random.PRNGKey(0)
    kx, kw, kb, ky = jax.random.split(key, 4)

    num_features = 2      # toydata.txt has 2 feature columns
    batch = 1024          # exercises tiling: tb capped to 512 -> grid=(2,)

    # TODO(synk): original script loads data/toydata.txt from disk; synthetic
    # deterministic data is used here instead (no file I/O allowed).
    x = jax.random.normal(kx, (batch, num_features), dtype=jnp.float32)
    weight = jax.random.uniform(
        kw, (1, num_features), minval=-1.0, maxval=1.0, dtype=jnp.float32
    )
    bias = jax.random.uniform(kb, (1,), minval=-1.0, maxval=1.0, dtype=jnp.float32)
    y = jax.random.bernoulli(ky, 0.5, (batch, 1)).astype(jnp.float32)

    ref = jax.nn.sigmoid(x @ weight.T + bias)

    # Fast path: caller keeps activations feature-major (no wrapper transpose).
    xt = jnp.asarray(x.T)                              # one-time layout choice
    a = jax.block_until_ready(logreg_forward_feature_major(xt, weight, bias))
    assert a.shape == (batch, 1)
    assert jnp.allclose(a, ref, atol=1e-5, rtol=1e-5)

    # (B, F) convenience wrapper (PyTorch nn.Linear activation layout).
    a_bf = jax.block_until_ready(logreg_forward(x, weight, bias))
    assert jnp.allclose(a_bf, ref, atol=1e-5, rtol=1e-5)

    # Ragged batch (not a multiple of the tile): no jnp.pad, partial last block.
    a_ragged = jax.block_until_ready(
        logreg_forward_feature_major(xt[:, :600], weight, bias)
    )
    assert jnp.allclose(a_ragged, ref[:600], atol=1e-5, rtol=1e-5)

    # Small batch: single full block (tb == B).
    a_small = jax.block_until_ready(
        logreg_forward_feature_major(xt[:, :8], weight, bias)
    )
    assert jnp.allclose(a_small, ref[:8], atol=1e-5, rtol=1e-5)

    # Exercise accuracy() path too.
    _ = jax.block_until_ready(logreg_accuracy(a, y))

    print("KERNEL_OK")
</pallas_src>

<mosaic_0001>
module attributes {stable_mosaic.version = 11 : i64} {
  func.func @_logreg_kernel(%arg0: i32, %arg1: memref<2x512xf32, #tpu.memory_space<vmem>>, %arg2: memref<2xf32, #tpu.memory_space<smem>>, %arg3: memref<1xf32, #tpu.memory_space<smem>>, %arg4: memref<1x512xf32, #tpu.memory_space<vmem>>) attributes {dimension_semantics = [#tpu.dimension_semantics<parallel>], iteration_bounds = array<i64: 2>, scalar_prefetch = 0 : i64, scratch_operands = 0 : i64, tpu.core_type = #tpu.core_type<tc>, window_params = [{transform_indices = @transform_0, window_bounds = array<i64: 2, 512>}, {transform_indices = @transform_1, window_bounds = array<i64: 2>}, {transform_indices = @transform_2, window_bounds = array<i64: 1>}, {transform_indices = @transform_3, window_bounds = array<i64: 1, 512>}]} {
    %c0 = arith.constant 0 : index
    %0 = memref.load %arg2[%c0] : memref<2xf32, #tpu.memory_space<smem>>
    %c0_0 = arith.constant 0 : index
    %c0_1 = arith.constant 0 : index
    %1 = vector.load %arg1[%c0_0, %c0_1] : memref<2x512xf32, #tpu.memory_space<vmem>>, vector<1x512xf32>
    %2 = vector.broadcast %0 : f32 to vector<1x512xf32>
    %3 = arith.mulf %2, %1 : vector<1x512xf32>
    %c1 = arith.constant 1 : index
    %4 = memref.load %arg2[%c1] : memref<2xf32, #tpu.memory_space<smem>>
    %c1_2 = arith.constant 1 : index
    %c0_3 = arith.constant 0 : index
    %5 = vector.load %arg1[%c1_2, %c0_3] : memref<2x512xf32, #tpu.memory_space<vmem>>, vector<1x512xf32>
    %6 = vector.broadcast %4 : f32 to vector<1x512xf32>
    %7 = arith.mulf %6, %5 : vector<1x512xf32>
    %8 = arith.addf %3, %7 : vector<1x512xf32>
    %c0_4 = arith.constant 0 : index
    %9 = memref.load %arg3[%c0_4] : memref<1xf32, #tpu.memory_space<smem>>
    %10 = vector.broadcast %9 : f32 to vector<1x512xf32>
    %11 = arith.addf %8, %10 : vector<1x512xf32>
    %cst = arith.constant 0.000000e+00 : f32
    %12 = vector.broadcast %cst : f32 to vector<1x512xf32>
    %13 = arith.subf %12, %11 : vector<1x512xf32>
    %14 = math.exp %13 : vector<1x512xf32>
    %cst_5 = arith.constant 1.000000e+00 : f32
    %15 = vector.broadcast %cst_5 : f32 to vector<1x512xf32>
    %16 = arith.addf %15, %14 : vector<1x512xf32>
    %cst_6 = arith.constant 1.000000e+00 : f32
    %17 = vector.broadcast %cst_6 : f32 to vector<1x512xf32>
    %18 = arith.divf %17, %16 : vector<1x512xf32>
    %c0_7 = arith.constant 0 : index
    %c0_8 = arith.constant 0 : index
    %19 = vector.load %arg4[%c0_7, %c0_8] : memref<1x512xf32, #tpu.memory_space<vmem>>, vector<1x512xf32>
    tpu.vector_store %arg4[%c0_7, %c0_8], %18 {strides = array<i32>} : memref<1x512xf32, #tpu.memory_space<vmem>>, vector<1x512xf32>,
    return
  }
  func.func @transform_0(%arg0: i32) -> (i32, i32) {
    %c0_i32 = arith.constant 0 : i32
    %c0_i32_0 = arith.constant 0 : i32
    return %c0_i32, %arg0 : i32, i32
  }
  func.func @transform_1(%arg0: i32) -> i32 {
    %c0_i32 = arith.constant 0 : i32
    %c0_i32_0 = arith.constant 0 : i32
    return %c0_i32 : i32
  }
  func.func @transform_2(%arg0: i32) -> i32 {
    %c0_i32 = arith.constant 0 : i32
    %c0_i32_0 = arith.constant 0 : i32
    return %c0_i32 : i32
  }
  func.func @transform_3(%arg0: i32) -> (i32, i32) {
    %c0_i32 = arith.constant 0 : i32
    %c0_i32_0 = arith.constant 0 : i32
    return %c0_i32, %arg0 : i32, i32
  }
}

</mosaic_0001>

<bundles_post_ra>
// kernel: tpu_custom_call.1
= control target key start
LH: loop header
LB: loop body
LE: loop exit
PB: predicated region body
PF: predicated region fallthrough
CT: control target
= control target key end

     0   :  { %s700_s0 = inlined_call_operand.hbm [shape: f32[2,1024], index: 0, kind: input, shape index: {}]   ;;  %s701_s1 = inlined_call_operand.vmem [shape: f32[2], index: 1, kind: input, shape index: {}]   ;;  %s702_s2 = inlined_call_operand.<no memory space> [shape: f32[1], index: 2, kind: input, shape index: {}]   ;;  %s703_s3 = inlined_call_operand.hbm [shape: f32[1,1024], index: 3, kind: output, shape index: {}]  }
   0x1   :  { %8 = sst [smem:[#allocation2]] %s702_s2 }
   0x2   :  { %9 = vsyncpa [#allocation4], 0 }
   0x3   :  { %11 = vsyncpa [#allocation4 + $0x1], 0 }
   0x4   :  { %12 = vsyncpa [#allocation6], 0 }
   0x5   :  { %13 = vsyncpa [#allocation5], 0 }
   0x6   :  { %15 = vsyncpa [#allocation5 + $0x1], 0  ;;  %s561_s14 = smov 0   ;;  %s563_s15 = smov 0  }
   0x7   :  { %s565_s16 = smov 0   ;;  %s567_s17 = smov 0  }
   0x8 LB: > { %s582_s2 = sadd.s32 4294967295, %s535_s17   ;;  %s341_s18 = sadd.s32 4294967294, %s535_s17   ;;  %s535_s17 = sphi %s567_s17, %s713_s17   ;;  %s531_s16 = sphi %s565_s16, %s712_s16   ;;  %s527_s15 = sphi %s563_s15, %s711_s15   ;;  %s523_s14 = sphi %s561_s14, %s710_s14  }
   0x9   : > { %p41_p0 = scmp.ne.s32.totalorder %s527_s15, %s523_s14  ;;  %p42_p1 = scmp.eq.s32.totalorder %s582_s2, 0 }
   0xa   : > { %p107_p2 = scmp.eq.s32.totalorder %s582_s2, 1  ;;  %p113_p3 = scmp.eq.s32.totalorder %s341_s18, 1 }
   0xb   : > { %p591_p4 = por %p42_p1, %p41_p0  ;;  %p342_p5 = scmp.ge.s32.totalorder %s535_s17, 1 }
   0xc   : > { %p596_p6 = por %p113_p3, %p41_p0  ;;  %p120_p7 = scmp.lt.s32.totalorder %s535_s17, 3 }
   0xd   : > { %s132_s23 = sshll.u32 %s701_s1, 4  ;;  %s612_s25 = sadd.s32 1, %s535_s17   ;;  %s133_s23 = int_to_ptr.vmem [resolvable:$true] %s132_s23 }
   0xe   : > { %p604_p8 = pnand %p342_p5, %p120_p7  ;;  %s25_s26 = ssub.s32 %s535_s17, %s612_s25 }
   0xf   : > { %p26_p12 = scmp.eq.s32.totalorder %s25_s26, 0  ;;  %s28_s27 = sadd.s32 1, %s531_s16 }
  0x10   : > { %p367_p10 = pneg %p604_p8  ;;  %p35_p13 = scmp.ne.s32.totalorder %s531_s16, %s527_s15 }
  0x11   : > { %s537_s28 = smov [#allocation7]   ;;  %p36_p0 = scmp.eq.s32.totalorder %s535_s17, 0 }
  0x12   : > { %p368_p11 = pnand %p367_p10, %p42_p1  ;;  %p627_p3 = por %p107_p2, %p35_p13 }
  0x13   : > { %s622_s29 = scalar_select %p26_p12, %s531_s16, %s28_s27  }
  0x14   : > { %370 = dma.vmem_to_smem (!%p368_p11), %s133_s23, 16, %s537_s28, [#allocation6]  }
  0x15   : > { %s146_s4 = sand.u32 1, %s531_s16   ;;  %p37_p5 = por %p36_p0, %p35_p13 }
  0x16   : > { %p380_p7 = scmp.lt.s32.totalorder %s535_s17, 2  ;;  %s345_s5 = sshll.u32 %s146_s4, 3 }
  0x17   : > { %s358_s6 = sshll.u32 %s535_s17, 3  ;;  %s150_s11 = scalar_lea.vmem [#allocation3], %s345_s5 }
  0x18   : > { %s155_s9 = scalar_lea.hbm %s700_s0, %s358_s6  ;;  %s159_s12 = sshll.u32 %s150_s11, 4  ;;  %s160_s12 = int_to_ptr.vmem [resolvable:$true] %s159_s12 }
  0x19   : > { %s157_s10 = sshll.u32 %s155_s9, 4  ;;  %p637_p10 = pnand %p380_p7, %p37_p5  ;;  %s158_s10 = int_to_ptr.hbm [resolvable:$true] %s157_s10 }
  0x1a   : > { %s147_s18 = scalar_lea.sflag [#allocation4], %s146_s4  ;;  %s435_s21 = sshra.s32 %s158_s10, 4  ;;  %s436_s21 = int_to_ptr.hbm [resolvable:$true] %s435_s21 }
  0x1b   : > { %s437_s22 = scalar_lea.hbm %s436_s21, 8  ;;  %p439_p11 = pneg %p637_p10 }
  0x1c   : > { %p438_p2 = scmp.ne.s32.totalorder %s436_s21, %s437_s22  ;;  %s442_s27 = scalar_lea.hbm %s700_s0, 16 }
  0x1d   : > { %p443_p0 = scmp.lt.s32.totalorder %s436_s21, %s700_s0  ;;  %p444_p5 = scmp.lt.s32.totalorder %s442_s27, %s437_s22 }
  0x1e   : > { %p440_p12 = pnand %p439_p11, %p438_p2 }
  0x1f   : > { %p445_p7 = por %p444_p5, %p443_p0 }
  0x20   : > { %p441_p13 = pneg %p440_p12 }
  0x22   : > { %p446_p9 = pnand %p445_p7, %p441_p13 }
  0x24   : > { %449 = shalt.err (!%p446_p9)
}
  0x25   : > { %374 = dma.hbm_to_vmem [thread:$0]  (!%p637_p10), %s158_s10, 128, %s160_s12, %s147_s18  }
  0x26   : > { %168 = sbr.rel (%p604_p8) target bundleno = 95 (0x5f), region = 32  ;;  %s654_s4 = sand.u32 (!%p604_p8), 1, %s527_s15  }
  0x27   : > { %s349_s6 = sshll.u32 (!%p604_p8), %s654_s4, 3  ;;  %s171_s7 = scalar_lea.sflag (!%p604_p8), [#allocation4], %s654_s4 }
  0x28   : > { %s174_s8 = scalar_lea.vmem (!%p604_p8), [#allocation3], %s349_s6 }
  0x2b   : > { %510 = dma.done.wait (%p591_p4), %s171_s7, 128  }
  0x2c   : > { %512 = vsyncadd (%p591_p4), %s171_s7, 4294967168 }
  0x2d   : > { %514 = dma.done.wait (%p42_p1), [#allocation6], 16  }
  0x2e   : > { %516 = vsyncadd (%p42_p1), [#allocation6], 4294967280 }
  0x2f   : > { %185 = sfence }
  0x30   : > { %s206_s24 = sld [smem:[#allocation7]]  ;;  %v207_v0 = vld [vmem:[%s174_s8] ss:$2 sm:$0xf]  ;;  %s351_s19 = sshll.u32 %s654_s4, 2  ;;  %v238_v18 = vlaneseq }
  0x31   : > { %s352_s9 = sld [smem:[#allocation7 + $0x1]]  ;;  %v353_v1 = vld [vmem:[%s174_s8 + $0x1] ss:$2 sm:$0xf]  ;;  %s355_s11 = sshll.u32 %s582_s2, 2 }
  0x32   : > { %s216_s10 = sld [smem:[#allocation2]]  ;;  %s254_s18 = scalar_lea.hbm %s703_s3, %s355_s11  ;;  %vm240_vm4 = vcmp.lt.s32.totalorder %v238_v18, 512 }
  0x33   : > { %s203_s21 = scalar_lea.vmem [#allocation8], %s351_s19  ;;  %s258_s23 = sshll.u32 %s254_s18, 4  ;;  %s259_s23 = int_to_ptr.hbm [resolvable:$true] %s258_s23 }
  0x34   : > { %s256_s22 = sshll.u32 %s203_s21, 4  ;;  %s244_s2 = scalar_lea.sflag [#allocation5], %s654_s4  ;;  %s257_s22 = int_to_ptr.vmem [resolvable:$true] %s256_s22 }
  0x35   : > { %s479_s26 = sshra.s32 %s259_s23, 4  ;;  %s485_s6 = scalar_lea.hbm %s703_s3, 8  ;;  %s480_s26 = int_to_ptr.hbm [resolvable:$true] %s479_s26 }
  0x36   : > { %v208_v2 = vstv %s206_s24  ;;  %s481_s27 = scalar_lea.hbm %s480_s26, 4  ;;  %p486_p9 = scmp.lt.s32.totalorder %s480_s26, %s703_s3 }
  0x37   : > { %v209_v3 = vmul.f32 %v208_v2, %v207_v0  ;;  %v213_v4 = vstv %s352_s9  ;;  %p482_p1 = scmp.ne.s32.totalorder %s480_s26, %s481_s27  ;;  %p487_p10 = scmp.lt.s32.totalorder %s485_s6, %s481_s27 }
  0x38   : > { %v214_v5 = vmul.f32 %v353_v1, %v213_v4  ;;  %v217_v6 = vstv %s216_s10 }
  0x39   : > { %p483_p4 = pnand %p482_p1, %p627_p3  ;;  %p488_p2 = por %p487_p10, %p486_p9 }
  0x3a   : > { %v215_v7 = vadd.f32 %v214_v5, %v209_v3 }
  0x3b   : > { %p484_p8 = pneg %p483_p4 }
  0x3c   : > { %v218_v8 = vadd.f32 %v217_v6, %v215_v7 }
  0x3d   : > { %p489_p11 = pnand %p488_p2, %p484_p8 }
  0x3e   : > { %v219_v9 = vsub.f32 0.0, %v218_v8 }
  0x40   : > { %v220_v10 = vmul.f32 1.442695, %v219_v9 }
  0x42   : > { %416 = vpow2.f32 %v220_v10 }
  0x48   : > { %v417_v11 = vpop.eup %416 }
  0x49   : > { %v222_v12 = vadd.f32 1.0, %v417_v11 }
  0x4b   : > { %418 = vrcp.f32 %v222_v12  ;;  %v234_v15 = vand.u32 2147483648, %v222_v12  ;;  %vm228_vm0 = vweird.f32 %v222_v12  ;;  %v232_v17 = vand.u32 2147483647, %v222_v12 }
  0x4d   : > { %v235_v20 = vor.u32 1.1754944e-38, %v234_v15  ;;  %vm233_vm3 = vcmp.eq.f32.partialorder %v232_v17, 8.507059e+37 }
  0x51   : > { %v419_v13 = vpop.eup %418 }
  0x52   : > { %v224_v14 = vmul.f32 %v419_v13, %v222_v12  ;;  %vm229_vm1 = vweird.f32 %v419_v13 }
  0x53   : > { %vm230_vm2 = vmor %vm228_vm0, %vm229_vm1 }
  0x54   : > { %v225_v16 = vsub.f32 1.0, %v224_v14 }
  0x56   : > { %v226_v19 = vmul.f32 %v419_v13, %v225_v16 }
  0x58   : > { %v227_v21 = vadd.f32 %v419_v13, %v226_v19 }
  0x5a   : > { %v231_v22 = vsel %vm230_vm2, %v419_v13, %v227_v21 }
  0x5b   : > { %v236_v23 = vsel %vm233_vm3, %v235_v20, %v231_v22 }
  0x5c   : > { %242 = vst.msk [vmem:[%s203_s21] sm:$0xf] %vm240_vm4, %v236_v23 }
  0x5d   : > { %492 = shalt.err (!%p489_p11)
}
  0x5e   : > { %365 = dma.vmem_to_hbm [thread:$0]  (%p627_p3), %s257_s22, 64, %s259_s23, %s244_s2  }
  0x5f PF: > { %s270_s4 = sand.u32 1, %s523_s14   ;;  %p709_p12 = scmp.ge.s32.totalorder %s535_s17, 2 }
  0x60   : > { %s271_s24 = scalar_lea.sflag [#allocation5], %s270_s4 }
  0x61   : > { %p376_p13 = pnand %p709_p12, %p596_p6 }
  0x63   : > { %p377_p0 = pneg %p376_p13 }
  0x65   : > { %518 = dma.done.wait (%p377_p0), %s271_s24, 64  }
  0x66   : > { %520 = vsyncadd (%p377_p0), %s271_s24, 4294967232  ;;  %p18_p5 = scmp.ge.s32.totalorder %s612_s25, 4   ;;  %s710_s14 = smov %s527_s15 }
  0x67   : > { %s711_s15 = smov %s531_s16  ;;  %s712_s16 = smov %s622_s29 }
  0x68   : > { %s713_s17 = smov %s612_s25  ;;  %20 = sbr.rel (!%p18_p5) target bundleno = 8 (0x8), region = 83 }
  0x6d   :  { %277 = vsyncpa [#allocation4], 1 }
  0x6e   :  { %279 = vsyncpa [#allocation4 + $0x1], 1 }
  0x6f   :  { %280 = vsyncpa [#allocation5], 1 }
  0x70   :  { %282 = vsyncpa [#allocation5 + $0x1], 1 }
  0x71   :  { %283 = vsyncpa [#allocation6], 1 }
  0x72   :  { %285 = vsyncpa [#allocation6 + $0x1], 1 }

</bundles_post_ra>
